<compile_context>
chip_gen: v7x
topology: tpu7x:2x2x1
jax: 0.10.0
libtpu: 0.0.40
codegen_flags: <defaults>
</compile_context>

<pallas_src>
import jax
import jax.numpy as jnp
from jax.experimental import pallas as pl
from jax.experimental.pallas import tpu as pltpu

_EPS = 1e-12            # F.normalize uses max(||x||, eps); identical for non-degenerate rows
_X_ITEMSIZE = 2         # x streamed as bf16
_OUT_ITEMSIZE = 2       # corr emitted as bf16


def _round_up(x, m):
    return ((x + m - 1) // m) * m


def _cdiv(a, b):
    return (a + b - 1) // b


def _vmem_capacity_bytes():
    """Physical VMEM for generation-aware tiling; conservative fallback (v7x = 64 MiB)."""
    try:
        info = pltpu.get_tpu_info()
        for attr in ("vmem_capacity_bytes", "vmem_size_bytes", "vmem_bytes"):
            cap = getattr(info, attr, None)
            if cap:
                return int(cap)
    except Exception:
        pass
    return 64 << 20


# ---------------------------------------------------------------------------
# Kernel 1: text / KG embedding fusion (tiny, runs once).
# ---------------------------------------------------------------------------
def _fuse_kernel(scal_ref, text_ref, kg_ref, gmat_ref, fused_ref, unit_ref):
    cw = scal_ref[0]    # class_weights (scalar, nn.Parameter(ones(1)))
    lkg = scal_ref[1]   # lambda_kg     (scalar, nn.Parameter(ones(1)))

    text = text_ref[...]          # (T, D) raw CLIP class embeddings
    kg = kg_ref[...]              # (N, D) raw CLIP KG-sentence embeddings
    gmat = gmat_ref[...]          # (T, N) per-class averaging matrix (1/group_size)

    # grouped weighted mean: (group * class_weights).mean(dim=0) == cw * gmat @ kg
    kg_grouped = cw * jnp.dot(gmat, kg, preferred_element_type=jnp.float32)  # (T, D)

    kg_norm = kg_grouped * jax.lax.rsqrt(
        jnp.sum(kg_grouped * kg_grouped, axis=-1, keepdims=True) + _EPS)
    text_norm = text * jax.lax.rsqrt(
        jnp.sum(text * text, axis=-1, keepdims=True) + _EPS)

    fused = text_norm + lkg * kg_norm           # text guidance passed to the Aggregator
    fused_ref[...] = fused
    # Pre-normalized bf16 copy for the cost-volume kernel (the Aggregator's
    # F.normalize(text_feats)) — hoisted here so kernel 2 never re-normalizes.
    unit = fused * jax.lax.rsqrt(
        jnp.sum(fused * fused, axis=-1, keepdims=True) + _EPS)
    unit_ref[...] = unit.astype(unit_ref.dtype)


def fuse_text_kg(text_raw, kg_raw, gmat, class_weights, lambda_kg):
    T, D = text_raw.shape
    N = kg_raw.shape[0]
    scalars = jnp.concatenate(
        [class_weights.reshape(1), lambda_kg.reshape(1)]).astype(jnp.float32)  # (2,)

    return pl.pallas_call(
        _fuse_kernel,
        out_shape=(jax.ShapeDtypeStruct((T, D), jnp.float32),
                   jax.ShapeDtypeStruct((T, D), jnp.bfloat16)),
        grid=(1,),
        in_specs=[
            pl.BlockSpec(memory_space=pltpu.MemorySpace.SMEM),   # scalars
            pl.BlockSpec((T, D), lambda i: (0, 0)),
            pl.BlockSpec((N, D), lambda i: (0, 0)),
            pl.BlockSpec((T, N), lambda i: (0, 0)),
        ],
        out_specs=(pl.BlockSpec((T, D), lambda i: (0, 0)),
                   pl.BlockSpec((T, D), lambda i: (0, 0))),
    )(scalars, text_raw.astype(jnp.float32), kg_raw.astype(jnp.float32),
      gmat.astype(jnp.float32))


# ---------------------------------------------------------------------------
# Kernel 2: Aggregator entry cosine cost volume (the matmul consuming `x`).
#   corr[b, p=0, t, h, w] = <normalize(x[b,:,h,w]), normalize(fused[t,:])>
# x is consumed in native NCHW layout as (B, D, HW) bf16; output is (B, T_pad, HW)
# bf16 (HW lane-dense), which reshapes to (B, 1, T, H, W) with no transposes.
# ---------------------------------------------------------------------------
def _corr_kernel(x_ref, t_ref, o_ref):
    x = x_ref[0]                                   # (D, tile_HW) bf16, native layout
    # f32 column norms of the activation (applied to the SMALL (T, tile) output
    # instead of normalizing the big (D, tile) slab before the matmul).
    xf = x.astype(jnp.float32)
    inv_xn = jax.lax.rsqrt(jnp.sum(xf * xf, axis=0, keepdims=True) + _EPS)  # (1, tile)
    # bf16 MXU operands, f32 accumulation; text block is already unit-norm bf16.
    raw = jnp.dot(t_ref[...], x, preferred_element_type=jnp.float32)        # (T_pad, tile)
    o_ref[0] = (raw * inv_xn).astype(o_ref.dtype)


def _footprint_bytes(tile, d, t_pad, x_bufs):
    """Per-call VMEM: multi-buffered bf16 x slabs + double-buffered bf16 output
    slabs + f32 upcast/square temporary + resident unit-norm text (double-buffered)."""
    return (x_bufs * d * tile * _X_ITEMSIZE
            + 2 * t_pad * tile * _OUT_ITEMSIZE
            + d * tile * 4
            + 2 * t_pad * d * 2)


def _pick_hw_tile(hw, d, t_pad, batch, vmem_capacity, x_bufs, max_tile=2048):
    """Largest 128-multiple HW tile fitting ~45% of physical VMEM (generation-aware).
    HW need not be divisible by the tile: the grid uses cdiv and Pallas pads the
    boundary block.  Also forces >= 2 grid steps when possible (v7x dual-TC)."""
    budget = int(0.45 * vmem_capacity)
    if hw <= 128:
        return hw, 1          # full-extent single block (satisfies (8,128) rule)
    upper = min((hw // 128) * 128, max_tile)
    best, tile = 128, 128
    while tile <= upper:
        if _footprint_bytes(tile, d, t_pad, x_bufs) <= budget:
            best = tile
        else:
            break
        tile += 128
    if batch * _cdiv(hw, best) < 2:
        half = max(128, _round_up(_cdiv(hw, 2), 128))
        if _cdiv(hw, half) >= 2:
            best = half       # split HW so both v7x TensorCores get work
    return best, _cdiv(hw, best)


def _x_block_spec(d, tile, deep_buffer):
    idx = lambda b, j: (b, 0, j)
    if deep_buffer:
        # 3-deep x pipeline on 128 MiB-VMEM chips (v5e/v6e) to hide DMA bubbles;
        # guarded in case this jax build's BlockSpec lacks pipeline_mode.
        try:
            return pl.BlockSpec((1, d, tile), idx, pipeline_mode=pl.Buffered(3))
        except TypeError:
            pass
    return pl.BlockSpec((1, d, tile), idx)


def cost_volume(x_flat_bf16, text_unit_bf16):
    """x_flat_bf16: (B, D, HW) bf16.  text_unit_bf16: (T_pad, D) bf16, unit-norm rows."""
    B, D, HW = x_flat_bf16.shape
    T_pad = text_unit_bf16.shape[0]

    cap = _vmem_capacity_bytes()
    deep_buffer = cap >= (100 << 20)            # 128 MiB chips only
    x_bufs = 3 if deep_buffer else 2
    tile, n_tiles = _pick_hw_tile(HW, D, T_pad, B, cap, x_bufs)
    footprint = _footprint_bytes(tile, D, T_pad, x_bufs)
    vmem_limit = int(min(max(footprint + (8 << 20), 32 << 20), int(0.7 * cap)))

    return pl.pallas_call(
        _corr_kernel,
        out_shape=jax.ShapeDtypeStruct((B, T_pad, HW), jnp.bfloat16),
        grid=(B, n_tiles),
        in_specs=[
            _x_block_spec(D, tile, deep_buffer),                 # x slab, native NCHW, bf16
            pl.BlockSpec((T_pad, D), lambda b, j: (0, 0)),       # text, resident
        ],
        out_specs=pl.BlockSpec((1, T_pad, tile), lambda b, j: (b, 0, j)),
        compiler_params=pltpu.CompilerParams(
            dimension_semantics=("parallel", "parallel"),        # B x HW-tiles over TCs
            vmem_limit_bytes=vmem_limit),
    )(x_flat_bf16, text_unit_bf16)


# ---------------------------------------------------------------------------
# Predictor wrapper (glue in plain JAX — no transposes, no materialized broadcasts)
# ---------------------------------------------------------------------------
def cat_seg_predictor_forward(x_nchw, text_raw, kg_raw, gmat,
                              class_weights, lambda_kg):
    """x_nchw: (B, D, H, W) CLIP dense image features (PyTorch NCHW)."""
    B, D, H, W = x_nchw.shape
    T = text_raw.shape[0]

    # ---- text guidance fusion (Pallas kernel 1) ----
    fused, fused_unit = fuse_text_kg(text_raw, kg_raw, gmat,
                                     class_weights, lambda_kg)   # (T,D) f32 / (T,D) bf16
    # PyTorch's attn_output.unsqueeze(1) -> (T, 1, D).  The .repeat(B, 1, 1, 1) is
    # batch replication only; returned un-materialized to avoid B identical HBM copies.
    text_guidance = fused[:, None, :]                            # (T, 1, D)

    # Pad classes to a multiple of 16 (bf16 sublane packing); zero rows give zero corr
    # and are sliced off below.
    T_pad = _round_up(T, 16)
    if T_pad != T:
        fused_unit = jnp.pad(fused_unit, ((0, T_pad - T), (0, 0)))

    # ---- Aggregator entry: cosine cost volume (Pallas kernel 2) ----
    # bf16 cast fused into the wrapper-side producer of the streamed activation.
    x_flat = x_nchw.astype(jnp.bfloat16).reshape(B, D, H * W)    # native layout, half traffic
    corr = cost_volume(x_flat, fused_unit)                       # (B, T_pad, HW) bf16
    corr = corr[:, :T].reshape(B, T, H, W)[:, None]              # (B, P=1, T, H, W)

    return {"text_guidance": text_guidance, "corr": corr}


if __name__ == "__main__":
    key = jax.random.PRNGKey(0)
    k1, k2, k3 = jax.random.split(key, 3)

    # Small deterministic shapes consistent with the module.
    B, D, H, W = 2, 128, 16, 16      # batch, CLIP embed dim, feature resolution
    T = 8                            # number of classes
    GROUP = 2                        # KG facts per class
    N = T * GROUP                    # total KG facts

    x = jax.random.normal(k1, (B, D, H, W), dtype=jnp.float32)        # NCHW
    text_raw = jax.random.normal(k2, (T, D), dtype=jnp.float32)       # encode_text(classes)
    kg_raw = jax.random.normal(k3, (N, D), dtype=jnp.float32)         # encode_text(KG facts)

    # Grouped-mean matrix: fact n belongs to class n // GROUP, weight 1/GROUP.
    cls_of_fact = jnp.arange(N) // GROUP
    gmat = (jnp.arange(T)[:, None] == cls_of_fact[None, :]).astype(jnp.float32) / GROUP

    class_weights = jnp.ones((1,), jnp.float32)   # nn.Parameter(torch.ones(1))
    lambda_kg = jnp.ones((1,), jnp.float32)       # nn.Parameter(torch.ones(1))

    out = cat_seg_predictor_forward(x, text_raw, kg_raw, gmat,
                                    class_weights, lambda_kg)
    jax.block_until_ready(out)

    assert out["text_guidance"].shape == (T, 1, D)
    assert out["corr"].shape == (B, 1, T, H, W)

    # Lightweight numerical check against a plain-JAX f32 reference
    # (loose tolerance: x streamed in bf16, corr stored in bf16).
    tn = text_raw / jnp.linalg.norm(text_raw, axis=-1, keepdims=True)
    kgg = class_weights[0] * (gmat @ kg_raw)
    kgn = kgg / jnp.linalg.norm(kgg, axis=-1, keepdims=True)
    fused_ref = tn + lambda_kg[0] * kgn
    fu = fused_ref / jnp.linalg.norm(fused_ref, axis=-1, keepdims=True)
    xn = x / jnp.linalg.norm(x, axis=1, keepdims=True)
    corr_ref = jnp.einsum("td,bdhw->bthw", fu, xn)[:, None]
    assert bool(jnp.allclose(out["text_guidance"][:, 0], fused_ref, atol=1e-4))
    assert float(jnp.max(jnp.abs(out["corr"].astype(jnp.float32) - corr_ref))) < 0.05

    print("KERNEL_OK")
</pallas_src>

<mosaic_0001>
module attributes {stable_mosaic.version = 11 : i64} {
  func.func @_fuse_kernel(%arg0: i32, %arg1: memref<2xf32, #tpu.memory_space<smem>>, %arg2: memref<8x128xf32, #tpu.memory_space<vmem>>, %arg3: memref<16x128xf32, #tpu.memory_space<vmem>>, %arg4: memref<8x16xf32, #tpu.memory_space<vmem>>, %arg5: memref<8x128xf32, #tpu.memory_space<vmem>>, %arg6: memref<8x128xbf16, #tpu.memory_space<vmem>>) attributes {dimension_semantics = [#tpu.dimension_semantics<arbitrary>], iteration_bounds = array<i64: 1>, scalar_prefetch = 0 : i64, scratch_operands = 0 : i64, tpu.core_type = #tpu.core_type<tc>, window_params = [{transform_indices = @transform_0, window_bounds = array<i64: 2>}, {pipeline_mode = #tpu.pipeline_mode<synchronous>, transform_indices = @transform_1, window_bounds = array<i64: 8, 128>}, {pipeline_mode = #tpu.pipeline_mode<synchronous>, transform_indices = @transform_2, window_bounds = array<i64: 16, 128>}, {pipeline_mode = #tpu.pipeline_mode<synchronous>, transform_indices = @transform_3, window_bounds = array<i64: 8, 16>}, {pipeline_mode = #tpu.pipeline_mode<synchronous>, transform_indices = @transform_4, window_bounds = array<i64: 8, 128>}, {pipeline_mode = #tpu.pipeline_mode<synchronous>, transform_indices = @transform_5, window_bounds = array<i64: 8, 128>}]} {
    %c0 = arith.constant 0 : index
    %0 = memref.load %arg1[%c0] : memref<2xf32, #tpu.memory_space<smem>>
    %c1 = arith.constant 1 : index
    %1 = memref.load %arg1[%c1] : memref<2xf32, #tpu.memory_space<smem>>
    %c0_0 = arith.constant 0 : index
    %c0_1 = arith.constant 0 : index
    %2 = vector.load %arg2[%c0_0, %c0_1] : memref<8x128xf32, #tpu.memory_space<vmem>>, vector<8x128xf32>
    %c0_2 = arith.constant 0 : index
    %c0_3 = arith.constant 0 : index
    %3 = vector.load %arg3[%c0_2, %c0_3] : memref<16x128xf32, #tpu.memory_space<vmem>>, vector<16x128xf32>
    %c0_4 = arith.constant 0 : index
    %c0_5 = arith.constant 0 : index
    %4 = vector.load %arg4[%c0_4, %c0_5] : memref<8x16xf32, #tpu.memory_space<vmem>>, vector<8x16xf32>
    %cst = arith.constant dense<0.000000e+00> : vector<8x128xf32>
    %5 = tpu.matmul %4, %3, %cst {dimension_numbers = #tpu.dot_dimension_numbers<[1], [0], [0], [1], [0, 0, 1, 1], [], []>} : vector<8x16xf32>, vector<16x128xf32>, vector<8x128xf32> -> vector<8x128xf32>
    %6 = vector.broadcast %0 : f32 to vector<8x128xf32>
    %7 = arith.mulf %6, %5 : vector<8x128xf32>
    %8 = arith.mulf %7, %7 : vector<8x128xf32>
    %cst_6 = arith.constant dense<0.000000e+00> : vector<8xf32>
    %9 = vector.multi_reduction <add>, %8, %cst_6 [1] : vector<8x128xf32> to vector<8xf32>
    %10 = vector.shape_cast %9 : vector<8xf32> to vector<8x1xf32>
    %cst_7 = arith.constant 9.99999996E-13 : f32
    %11 = vector.broadcast %cst_7 : f32 to vector<8x1xf32>
    %12 = arith.addf %10, %11 : vector<8x1xf32>
    %13 = math.rsqrt %12 : vector<8x1xf32>
    %14 = vector.broadcast %13 : vector<8x1xf32> to vector<8x128xf32>
    %15 = arith.mulf %7, %14 : vector<8x128xf32>
    %16 = arith.mulf %2, %2 : vector<8x128xf32>
    %cst_8 = arith.constant dense<0.000000e+00> : vector<8xf32>
    %17 = vector.multi_reduction <add>, %16, %cst_8 [1] : vector<8x128xf32> to vector<8xf32>
    %18 = vector.shape_cast %17 : vector<8xf32> to vector<8x1xf32>
    %cst_9 = arith.constant 9.99999996E-13 : f32
    %19 = vector.broadcast %cst_9 : f32 to vector<8x1xf32>
    %20 = arith.addf %18, %19 : vector<8x1xf32>
    %21 = math.rsqrt %20 : vector<8x1xf32>
    %22 = vector.broadcast %21 : vector<8x1xf32> to vector<8x128xf32>
    %23 = arith.mulf %2, %22 : vector<8x128xf32>
    %24 = vector.broadcast %1 : f32 to vector<8x128xf32>
    %25 = arith.mulf %24, %15 : vector<8x128xf32>
    %26 = arith.addf %23, %25 : vector<8x128xf32>
    %c0_10 = arith.constant 0 : index
    %c0_11 = arith.constant 0 : index
    %27 = vector.load %arg5[%c0_10, %c0_11] : memref<8x128xf32, #tpu.memory_space<vmem>>, vector<8x128xf32>
    tpu.vector_store %arg5[%c0_10, %c0_11], %26 {strides = array<i32>} : memref<8x128xf32, #tpu.memory_space<vmem>>, vector<8x128xf32>,
    %28 = arith.mulf %26, %26 : vector<8x128xf32>
    %cst_12 = arith.constant dense<0.000000e+00> : vector<8xf32>
    %29 = vector.multi_reduction <add>, %28, %cst_12 [1] : vector<8x128xf32> to vector<8xf32>
    %30 = vector.shape_cast %29 : vector<8xf32> to vector<8x1xf32>
    %cst_13 = arith.constant 9.99999996E-13 : f32
    %31 = vector.broadcast %cst_13 : f32 to vector<8x1xf32>
    %32 = arith.addf %30, %31 : vector<8x1xf32>
    %33 = math.rsqrt %32 : vector<8x1xf32>
    %34 = vector.broadcast %33 : vector<8x1xf32> to vector<8x128xf32>
    %35 = arith.mulf %26, %34 : vector<8x128xf32>
    %36 = arith.truncf %35 : vector<8x128xf32> to vector<8x128xbf16>
    %c0_14 = arith.constant 0 : index
    %c0_15 = arith.constant 0 : index
    %37 = vector.load %arg6[%c0_14, %c0_15] : memref<8x128xbf16, #tpu.memory_space<vmem>>, vector<8x128xbf16>
    tpu.vector_store %arg6[%c0_14, %c0_15], %36 {strides = array<i32>} : memref<8x128xbf16, #tpu.memory_space<vmem>>, vector<8x128xbf16>,
    return
  }
  func.func @transform_0(%arg0: i32) -> i32 {
    %c0_i32 = arith.constant 0 : i32
    %c0_i32_0 = arith.constant 0 : i32
    return %c0_i32 : i32
  }
  func.func @transform_1(%arg0: i32) -> (i32, i32) {
    %c0_i32 = arith.constant 0 : i32
    %c0_i32_0 = arith.constant 0 : i32
    %c0_i32_1 = arith.constant 0 : i32
    return %c0_i32, %c0_i32_0 : i32, i32
  }
  func.func @transform_2(%arg0: i32) -> (i32, i32) {
    %c0_i32 = arith.constant 0 : i32
    %c0_i32_0 = arith.constant 0 : i32
    %c0_i32_1 = arith.constant 0 : i32
    return %c0_i32, %c0_i32_0 : i32, i32
  }
  func.func @transform_3(%arg0: i32) -> (i32, i32) {
    %c0_i32 = arith.constant 0 : i32
    %c0_i32_0 = arith.constant 0 : i32
    %c0_i32_1 = arith.constant 0 : i32
    return %c0_i32, %c0_i32_0 : i32, i32
  }
  func.func @transform_4(%arg0: i32) -> (i32, i32) {
    %c0_i32 = arith.constant 0 : i32
    %c0_i32_0 = arith.constant 0 : i32
    %c0_i32_1 = arith.constant 0 : i32
    return %c0_i32, %c0_i32_0 : i32, i32
  }
  func.func @transform_5(%arg0: i32) -> (i32, i32) {
    %c0_i32 = arith.constant 0 : i32
    %c0_i32_0 = arith.constant 0 : i32
    %c0_i32_1 = arith.constant 0 : i32
    return %c0_i32, %c0_i32_0 : i32, i32
  }
}

</mosaic_0001>

<bundles_post_ra>
// kernel: tpu_custom_call.1
= control target key start
LH: loop header
LB: loop body
LE: loop exit
PB: predicated region body
PF: predicated region fallthrough
CT: control target
= control target key end

     0   :  { %11 = vsyncpa [#allocation5], 0  ;;  %s437_s0 = inlined_call_operand.hbm [shape: f32[2], index: 0, kind: input, shape index: {}]   ;;  %s438_s1 = inlined_call_operand.hbm [shape: f32[8,128], index: 1, kind: input, shape index: {}]   ;;  %s439_s2 = inlined_call_operand.hbm [shape: f32[16,128], index: 2, kind: input, shape index: {}]   ;;  %s440_s3 = inlined_call_operand.vmem [shape: f32[8,16], index: 3, kind: input, shape index: {}]   ;;  %s441_s4 = inlined_call_operand.hbm [shape: f32[8,128], index: 4, kind: output, shape index: {0}]   ;;  %s442_s5 = inlined_call_operand.hbm [shape: bf16[8,128], index: 5, kind: output, shape index: {1}]  }
   0x1   :  { %12 = vsyncpa [#allocation3], 0 }
   0x2   :  { %13 = vsyncpa [#allocation8], 0 }
   0x3   :  { %14 = vsyncpa [#allocation4], 0 }
   0x4   :  { %15 = vsyncpa [#allocation11], 0  ;;  %s226_s20 = scalar_lea.hbm %s437_s0, 16 }
   0x5   :  { %p227_p0 = scmp.ne.s32.totalorder %s437_s0, %s226_s20  ;;  %p230_p1 = scmp.lt.u32.totalorder %s226_s20, %s437_s0 }
   0x7   :  { %p232_p2 = pnand %p230_p1, %p227_p0 }
   0x9   :  { %235 = shalt.err (!%p232_p2)
}
   0xa   :  { %s334_s25 = smov [#allocation2]   ;;  %s335_s28 = smov [#allocation6]  }
   0xb   :  { %23 = dma.hbm_to_smem %s437_s0, 16, %s334_s25, [#allocation5]  }
   0xc   :  { %s30_s29 = sshll.u32 %s335_s28, 4  ;;  %s336_s30 = smov [#allocation7]   ;;  %s31_s29 = int_to_ptr.vmem [resolvable:$true] %s30_s29 }
   0xd   :  { %s39_s6 = sshll.u32 %s336_s30, 4  ;;  %s236_s9 = scalar_lea.hbm %s438_s1, 128  ;;  %s40_s6 = int_to_ptr.vmem [resolvable:$true] %s39_s6 }
   0xe   :  { %p237_p3 = scmp.ne.s32.totalorder %s438_s1, %s236_s9  ;;  %p240_p4 = scmp.lt.u32.totalorder %s236_s9, %s438_s1 }
  0x10   :  { %p242_p5 = pnand %p240_p4, %p237_p3 }
  0x12   :  { %245 = shalt.err (!%p242_p5)
}
  0x13   :  { %s246_s0 = scalar_lea.vmem %s31_s29, 128  ;;  %p251_p7 = scmp.lt.s32.totalorder %s31_s29, %s31_s29 }
  0x14   :  { %p247_p6 = scmp.ne.s32.totalorder %s31_s29, %s246_s0  ;;  %p252_p8 = scmp.lt.s32.totalorder %s246_s0, %s246_s0 }
  0x16   :  { %p253_p9 = por %p252_p8, %p251_p7 }
  0x18   :  { %p254_p10 = pnand %p253_p9, %p247_p6 }
  0x1a   :  { %257 = shalt.err (!%p254_p10)
}
  0x1b   :  { %33 = dma.hbm_to_vmem [thread:$0]  %s438_s1, 128, %s31_s29, [#allocation3]  }
  0x1c   :  { %s258_s18 = scalar_lea.hbm %s439_s2, 256 }
  0x1d   :  { %p259_p11 = scmp.ne.s32.totalorder %s439_s2, %s258_s18  ;;  %p262_p12 = scmp.lt.u32.totalorder %s258_s18, %s439_s2 }
  0x1f   :  { %p264_p13 = pnand %p262_p12, %p259_p11 }
  0x21   :  { %267 = shalt.err (!%p264_p13)
}
  0x22   :  { %s268_s23 = scalar_lea.vmem %s40_s6, 256  ;;  %p273_p1 = scmp.lt.s32.totalorder %s40_s6, %s40_s6 }
  0x23   :  { %p269_p0 = scmp.ne.s32.totalorder %s40_s6, %s268_s23  ;;  %p274_p2 = scmp.lt.s32.totalorder %s268_s23, %s268_s23 }
  0x25   :  { %p275_p3 = por %p274_p2, %p273_p1 }
  0x27   :  { %p276_p4 = pnand %p275_p3, %p269_p0 }
  0x29   :  { %279 = shalt.err (!%p276_p4)
}
  0x2a   :  { %s337_s1 = smov 128   ;;  %s338_s24 = smov 8  }
  0x2b   :  { %45 = dma.hbm_to_vmem [thread:$0]  %s439_s2, 256, %s40_s6, [#allocation8], %s337_s1, %s337_s1, %s338_s24  }
  0x2c   :  { %324 = dma.done.wait [#allocation5], 16  }
  0x2d   :  { %325 = vsyncadd [#allocation5], 4294967280 }
  0x2e   :  { %326 = dma.done.wait [#allocation3], 128  }
  0x2f   :  { %327 = vsyncadd [#allocation3], 4294967168 }
  0x30   :  { %328 = dma.done.wait [#allocation8], 256  }
  0x31   :  { %329 = vsyncadd [#allocation8], 4294967040 }
  0x32   :  { %57 = sfence }
  0x33   :  { %v61_v0 = vld [vmem:[#allocation7] sm:$0xff]  ;;  %v62_v1 = vld [vmem:[#allocation7 + $0x8] sm:$0xff]  ;;  %v339_v2 = vmov 0.0|0.0   ;;  %vm340_vm0 = vmmov 0   ;;  %v341_v4 = vmov 0.0   ;;  %v63_v5 = vld [vmem:[%s440_s3] sm:$0xff] }
  0x34   :  { %207 = vmatprep.subr.bf16.mxu0 %v339_v2  ;;  %v208_v3 = vpack.c.bf16 %v62_v1, %v61_v0  ;;  %204 = vmatprep.mubr.msk.f32.mxu0 %vm340_vm0, %v341_v4  ;;  %vm64_vm1 = vcmask 130048   ;;  %s58_s2 = sld [smem:[#allocation2]]  ;;  %v60_v10 = vld [vmem:[#allocation6] sm:$0xff]  ;;  %s195_s29 = sld [smem:[#allocation2 + $0x1]] }
  0x35   :  { %v146_v12 = vmul.f32 %v60_v10, %v60_v10  ;;  %s342_s3 = smov [#allocation9]  }
  0x36   :  { %209 = vmatpush3.bf16.msra.mxu0 %v208_v3  ;;  %s170_s30 = sshll.u32 %s342_s3, 4  ;;  %s171_s30 = int_to_ptr.vmem [resolvable:$true] %s170_s30 }
  0x37   :  { %s280_s6 = scalar_lea.vmem %s171_s30, 128  ;;  %p285_p6 = scmp.lt.s32.totalorder %s171_s30, %s171_s30 }
  0x38   :  { %p281_p5 = scmp.ne.s32.totalorder %s171_s30, %s280_s6  ;;  %p286_p7 = scmp.lt.s32.totalorder %s280_s6, %s280_s6 }
  0x39   :  { %205 = vmatmul.mubr.msk.f32.vlgmr.msra.gmra.mrb[0].mxu0 %vm64_vm1, %v63_v5 }
  0x3a   :  { %v138_v6 = vstv %s58_s2  ;;  %v152_v19 = vstv %s195_s29  ;;  %p287_p8 = por %p286_p7, %p285_p6 }
  0x3c   :  { %p288_p9 = pnand %p287_p8, %p281_p5 }
 0x10c   :  { %v134_v7 = vpop.f32.mrb[0].mxu0 }
 0x10d   :  { %v139_v8 = vmul.f32 %v138_v6, %v134_v7  ;;  %v206_v9 = vpop.f32.mrb[1].mxu0 }
 0x10f   :  { %v140_v11 = vmul.f32 %v139_v8, %v139_v8 }
 0x111   :  { %141 = vadd.xlane.f32.xlu0 %v140_v11 }
 0x115   :  { %147 = vadd.xlane.f32.xlu0 %v146_v12 }
 0x19e   :  { %v142_v13 = vpop.xlane.xlu0 %141 }
 0x19f   :  { %v143_v14 = vadd.f32 1e-12, %v142_v13 }
 0x1a1   :  { %220 = vrsqrt.f32 %v143_v14 }
 0x1a2   :  { %v148_v15 = vpop.xlane.xlu0 %147 }
 0x1a3   :  { %v149_v16 = vadd.f32 1e-12, %v148_v15 }
 0x1a5   :  { %222 = vrsqrt.f32 %v149_v16 }
 0x1ab   :  { %v221_v17 = vpop.eup %220 }
 0x1ac   :  { %v145_v18 = vmul.f32 %v221_v17, %v139_v8 }
 0x1ae   :  { %v153_v22 = vmul.f32 %v152_v19, %v145_v18 }
 0x1af   :  { %v223_v20 = vpop.eup %222 }
 0x1b0   :  { %v151_v21 = vmul.f32 %v223_v20, %v60_v10 }
 0x1b2   :  { %v154_v23 = vadd.f32 %v153_v22, %v151_v21 }
 0x1b4   :  { %v156_v24 = vmul.f32 %v154_v23, %v154_v23  ;;  %155 = vst [vmem:[#allocation9] sm:$0xff] %v154_v23 }
 0x1b6   :  { %157 = vadd.xlane.f32.xlu1 %v156_v24 }
 0x1b7   :  { %291 = shalt.err (!%p288_p9)
}
 0x1b8   :  { %s292_s9 = scalar_lea.hbm %s441_s4, 128 }
 0x1b9   :  { %p293_p10 = scmp.ne.s32.totalorder %s441_s4, %s292_s9  ;;  %p296_p11 = scmp.lt.u32.totalorder %s292_s9, %s441_s4 }
 0x1bb   :  { %p298_p12 = pnand %p296_p11, %p293_p10 }
 0x1bd   :  { %301 = shalt.err (!%p298_p12)
}
 0x1be   :  { %173 = dma.vmem_to_hbm [thread:$0]  %s171_s30, 128, %s441_s4, [#allocation4]  }
 0x1bf   :  { %s343_s15 = smov [#allocation10]  }
 0x1c0   :  { %s180_s16 = sshll.u32 %s343_s15, 4  ;;  %s181_s16 = int_to_ptr.vmem [resolvable:$true] %s180_s16 }
 0x1c1   :  { %s302_s17 = scalar_lea.vmem %s181_s16, 64  ;;  %p307_p0 = scmp.lt.s32.totalorder %s181_s16, %s181_s16 }
 0x1c2   :  { %p303_p13 = scmp.ne.s32.totalorder %s181_s16, %s302_s17  ;;  %p308_p1 = scmp.lt.s32.totalorder %s302_s17, %s302_s17 }
 0x1c4   :  { %p309_p2 = por %p308_p1, %p307_p0 }
 0x1c6   :  { %p310_p3 = pnand %p309_p2, %p303_p13 }
 0x243   :  { %v158_v25 = vpop.xlane.xlu1 %157 }
 0x244   :  { %v159_v26 = vadd.f32 1e-12, %v158_v25 }
 0x246   :  { %224 = vrsqrt.f32 %v159_v26 }
 0x250   :  { %v225_v27 = vpop.eup %224 }
 0x251   :  { %v161_v28 = vmul.f32 %v225_v27, %v154_v23 }
 0x253   :  { %v162_v29 = vpack.c.bf16 %v161_v28, %v161_v28 }
 0x255   :  { %163 = vst [vmem:[#allocation10] sm:$0xf] %v162_v29 }
 0x256   :  { %313 = shalt.err (!%p310_p3)
}
 0x257   :  { %s314_s4 = scalar_lea.hbm %s442_s5, 64 }
 0x258   :  { %p315_p4 = scmp.ne.s32.totalorder %s442_s5, %s314_s4  ;;  %p318_p5 = scmp.lt.u32.totalorder %s314_s4, %s442_s5 }
 0x25a   :  { %p320_p6 = pnand %p318_p5, %p315_p4 }
 0x25c   :  { %323 = shalt.err (!%p320_p6)
}
 0x25d   :  { %183 = dma.vmem_to_hbm [thread:$0]  %s181_s16, 64, %s442_s5, [#allocation11]  }
 0x25e   :  { %330 = dma.done.wait [#allocation4], 128  }
 0x25f   :  { %331 = vsyncadd [#allocation4], 4294967168 }
 0x260   :  { %332 = dma.done.wait [#allocation11], 64  }
 0x261   :  { %333 = vsyncadd [#allocation11], 4294967232 }
 0x262   :  { %190 = vsyncpa [#allocation3], 1 }
 0x263   :  { %191 = vsyncpa [#allocation8], 1 }
 0x264   :  { %192 = vsyncpa [#allocation4], 1 }
 0x265   :  { %193 = vsyncpa [#allocation11], 1 }
 0x266   :  { %194 = vsyncpa [#allocation5], 1 }

</bundles_post_ra>
